<compile_context>
chip_gen: v5e
topology: v5e:2x2
jax: 0.10.0
libtpu: 0.0.40
codegen_flags: <defaults>
</compile_context>

<pallas_src>
import jax
import jax.numpy as jnp
from jax.experimental import pallas as pl
from jax.experimental.pallas import tpu as pltpu

LANE = 128   # TPU lane width (last-dim tile)
SUB = 8      # f32 sublane width

# Weight slab: five 128x128 bf16 tiles (640 rows -> also (16,128) bf16-tile aligned).
_W_NAMES = ("w1", "w2", "w3", "wg1c", "wg2")
_WOFF = {n: i * LANE for i, n in enumerate(_W_NAMES)}
_W_ROWS = LANE * len(_W_NAMES)          # 640

# Bias/mask tile rows (single 8x128 f32 tile).
_ROW_B1, _ROW_B2, _ROW_B3, _ROW_BG1, _ROW_BG2, _ROW_MASK = range(6)


def _round_up(x, m):
    return (x + m - 1) // m * m


# ----------------------------------------------------------------------------
# Kernel: full forward pass, fused; one batch tile per grid step.
# ----------------------------------------------------------------------------
def _make_kernel(F, E):
    """F = num_features (tf lane count), E = embedding size (z0 lane count)."""

    def kernel(tf_ref, z0_ref, w_ref, b_ref, out_ref):
        f32, bf16 = jnp.float32, jnp.bfloat16

        def w(name, rows=LANE):             # bf16 weight tile / row-slice, static offsets
            return w_ref[pl.ds(_WOFF[name], rows), :]

        def b(row):                         # (1,128) f32 bias row; broadcast add is a
            return b_ref[pl.ds(row, 1), :]  # single-vreg op at these batch tiles

        tf = tf_ref[...]                    # (TB, F)  bf16
        z0 = z0_ref[...]                    # (TB, E)  bf16

        # --- softmax_alpha MLP: bf16 MXU operands, f32 accumulate, f32 elementwise.
        h = jnp.maximum(
            jnp.dot(tf, w("w1", F), preferred_element_type=f32) + b(_ROW_B1), 0.0)
        h = jnp.maximum(
            jnp.dot(h.astype(bf16), w("w2"), preferred_element_type=f32) + b(_ROW_B2), 0.0)
        logits = jnp.maximum(                     # ReLU before softmax (dup-key quirk)
            jnp.dot(h.astype(bf16), w("w3"), preferred_element_type=f32) + b(_ROW_B3), 0.0)

        # Additive lane mask from the bias tile: 0 in lanes [V,V+T), -1e30 elsewhere.
        logits = logits + b(_ROW_MASK)

        # f32 softmax.  INVARIANT: masked lanes must come out as *exactly* 0.0
        # (exp(-1e30 - m) underflows to +0.0 in f32).  The pii-dot against wg1c and
        # the merged out+pii output both rely on this -- keep this path in f32.
        m = jnp.max(logits, axis=-1, keepdims=True)
        e = jnp.exp(logits - m)
        d = jnp.sum(e, axis=-1, keepdims=True)
        r = pl.reciprocal(d, approx=True)         # EUP slot (free)
        r = r * (2.0 - d * r)                     # one Newton step -> full f32 accuracy
        pii = e * r                               # (TB,128) f32, nonzero only [V,V+T)

        # --- g MLP.  concat(z0, pii@emb) @ wg1 == z0 @ wg1[:E] + pii @ (emb @ wg1[E:]).
        # emb@wg1[E:] was folded (in f32) into rows [V,V+T) of the wg1c tile at pack
        # time; rows [0,E) hold wg1[:E] and are harmless in the pii dot because pii
        # lanes [0,E) are exactly zero (invariant above).
        g = (jnp.dot(z0, w("wg1c", E), preferred_element_type=f32)
             + jnp.dot(pii.astype(bf16), w("wg1c"), preferred_element_type=f32)
             + b(_ROW_BG1))
        g = jnp.maximum(g, 0.0)
        out = jnp.dot(g.astype(bf16), w("wg2"), preferred_element_type=f32) + b(_ROW_BG2)

        # Merged lane-dense output: `out` in lanes [0,V), `pii` in lanes [V,V+T).
        out_ref[...] = out + pii

    return kernel


# ----------------------------------------------------------------------------
# Host-side packing: one bf16 weight slab + one f32 bias/mask tile.
# ----------------------------------------------------------------------------
def pack_params(p, *, F, H, E, T, V):
    assert F <= LANE and H <= LANE and E <= LANE, "larger dims need K/N tiling"
    assert V + T <= LANE and E <= V, "merged-output layout needs V+T<=128 and E<=V"

    def wblk(mat, c0=0):
        blk = jnp.zeros((LANE, LANE), jnp.float32)
        return blk.at[:mat.shape[0], c0:c0 + mat.shape[1]].set(mat)

    # Fold the topic-embedding matmul into the g-layer weight (constant per param set).
    emb_wg1 = p["emb"] @ p["wg1"][E:, :]                          # [T, H], f32
    wg1c = wblk(p["wg1"][:E, :])
    wg1c = wg1c.at[V:V + T, :emb_wg1.shape[1]].set(emb_wg1)

    w_slab = jnp.concatenate(
        [wblk(p["w1"]), wblk(p["w2"]), wblk(p["w3"], c0=V), wg1c, wblk(p["wg2"])],
        axis=0).astype(jnp.bfloat16)
    assert w_slab.shape == (_W_ROWS, LANE)

    bias = jnp.zeros((SUB, LANE), jnp.float32)
    bias = bias.at[_ROW_B1, :H].set(p["b1"].reshape(-1))
    bias = bias.at[_ROW_B2, :H].set(p["b2"].reshape(-1))
    bias = bias.at[_ROW_B3, V:V + T].set(p["b3"].reshape(-1))
    bias = bias.at[_ROW_BG1, :H].set(p["bg1"].reshape(-1))
    bias = bias.at[_ROW_BG2, :V].set(p["bg2"].reshape(-1))
    mask = jnp.full((LANE,), -1e30, jnp.float32).at[V:V + T].set(0.0)
    bias = bias.at[_ROW_MASK, :].set(mask)
    return w_slab, bias


def description_decoder_forward(topic_features, z0, w_slab, bias_blk, *,
                                F, E, T, V, batch_block=256):
    """Run the fused kernel.  Returns (out [B, V], pii [B, T])."""
    B = topic_features.shape[0]
    # Small B: single whole-array block (no padding at all).  Large B: 256-row tiles
    # (bf16 sublane aligned); the constant-index param BlockSpecs keep the slab
    # resident across tiles, and the "parallel" axis shards tiles over v7x's 2 TCs.
    if B <= batch_block:
        TB, Bp = B, B
    else:
        TB = batch_block
        Bp = _round_up(B, TB)
        topic_features = jnp.pad(topic_features, ((0, Bp - B), (0, 0)))
        z0 = jnp.pad(z0, ((0, Bp - B), (0, 0)))

    # bf16 activations halve input DMA; ideally the upstream producer emits bf16.
    tf_b = topic_features.astype(jnp.bfloat16)
    z0_b = z0.astype(jnp.bfloat16)

    slab = pl.pallas_call(
        _make_kernel(F, E),
        out_shape=jax.ShapeDtypeStruct((Bp, LANE), jnp.float32),
        grid=(Bp // TB,),
        in_specs=[
            pl.BlockSpec((TB, F), lambda i: (i, 0)),           # topic_features tile
            pl.BlockSpec((TB, E), lambda i: (i, 0)),           # z0 tile
            pl.BlockSpec((_W_ROWS, LANE), lambda i: (0, 0)),   # weight slab: resident
            pl.BlockSpec((SUB, LANE), lambda i: (0, 0)),       # bias+mask: resident
        ],
        out_specs=pl.BlockSpec((TB, LANE), lambda i: (i, 0)),
        compiler_params=pltpu.CompilerParams(
            dimension_semantics=("parallel",)),
    )(tf_b, z0_b, w_slab, bias_blk)

    return slab[:B, :V], slab[:B, V:V + T]


# ----------------------------------------------------------------------------
# Deterministic parameter init (matches module __init__ shapes & init scheme).
# ----------------------------------------------------------------------------
def init_params(key, hidden, emb, n_topics, vocab, num_features):
    ks = jax.random.split(key, 7)

    def xavier_normal(k, fan_in, fan_out):
        std = (2.0 / (fan_in + fan_out)) ** 0.5
        return std * jax.random.normal(k, (fan_in, fan_out), jnp.float32)

    def xavier_uniform(k, fan_in, fan_out, shape):
        a = (6.0 / (fan_in + fan_out)) ** 0.5
        return jax.random.uniform(k, shape, jnp.float32, -a, a)

    return {
        "w1": xavier_normal(ks[0], num_features, hidden),
        "b1": jnp.zeros((1, hidden), jnp.float32),
        "w2": xavier_normal(ks[1], hidden, hidden),
        "b2": jnp.zeros((1, hidden), jnp.float32),
        "w3": xavier_normal(ks[2], hidden, n_topics),
        "b3": jnp.zeros((1, n_topics), jnp.float32),
        "emb": xavier_uniform(ks[3], n_topics, emb, (n_topics, emb)),
        "wg1": xavier_normal(ks[4], 2 * emb, hidden),
        "bg1": jnp.zeros((1, hidden), jnp.float32),
        "wg2": xavier_normal(ks[5], hidden, vocab),
        "bg2": jnp.zeros((1, vocab), jnp.float32),
    }


# ----------------------------------------------------------------------------
# Pure-JAX references.
# ----------------------------------------------------------------------------
def reference_forward(tf, z0, p):
    """Full-f32 module semantics (including the duplicate-key quirk)."""
    h = jnp.maximum(tf @ p["w1"] + p["b1"], 0.0)
    h = jnp.maximum(h @ p["w2"] + p["b2"], 0.0)
    logits = jnp.maximum(h @ p["w3"] + p["b3"], 0.0)
    pii = jax.nn.softmax(logits, axis=-1)
    zi = pii @ p["emb"]
    feat = jnp.concatenate([z0, zi], axis=-1)
    g = jnp.maximum(feat @ p["wg1"] + p["bg1"], 0.0)
    out = g @ p["wg2"] + p["bg2"]
    return out, pii


def reference_forward_mixed(tf, z0, p, *, E):
    """The kernel's intended numerics: bf16 MXU operands, f32 accumulate/elementwise,
    f32 softmax, emb@wg1 folded in f32 before the bf16 cast (as pack_params does)."""
    f32, bf16 = jnp.float32, jnp.bfloat16
    dot = lambda a, b: jnp.dot(a.astype(bf16), b.astype(bf16), preferred_element_type=f32)
    h = jnp.maximum(dot(tf, p["w1"]) + p["b1"], 0.0)
    h = jnp.maximum(dot(h, p["w2"]) + p["b2"], 0.0)
    logits = jnp.maximum(dot(h, p["w3"]) + p["b3"], 0.0)
    pii = jax.nn.softmax(logits, axis=-1)
    emb_wg1 = p["emb"] @ p["wg1"][E:, :]
    g = jnp.maximum(dot(z0, p["wg1"][:E, :]) + dot(pii, emb_wg1) + p["bg1"], 0.0)
    out = dot(g, p["wg2"]) + p["bg2"]
    return out, pii


if __name__ == "__main__":
    # Small config: hidden=32, embedding=16, topics=8, vocab=64, lstm_layers=2,
    # desc_feature='BOTH' -> num_features = 3*16 + 32*2 = 112, batch=8.
    hidden, emb, n_topics, vocab, lstm_layers = 32, 16, 8, 64, 2
    num_features = emb * 3 + hidden * lstm_layers
    B = 8

    key = jax.random.PRNGKey(0)
    kp, kx, kz = jax.random.split(key, 3)
    params = init_params(kp, hidden, emb, n_topics, vocab, num_features)
    w_slab, bias_blk = pack_params(params, F=num_features, H=hidden, E=emb,
                                   T=n_topics, V=vocab)

    topic_features = jax.random.normal(kx, (B, num_features), jnp.float32)
    z0 = jax.random.normal(kz, (B, emb), jnp.float32)

    out, pii = description_decoder_forward(
        topic_features, z0, w_slab, bias_blk,
        F=num_features, E=emb, T=n_topics, V=vocab)
    jax.block_until_ready((out, pii))

    assert out.shape == (B, vocab) and pii.shape == (B, n_topics)

    # Tight check vs a pure-JAX reference of the same bf16/f32 mixed-precision math.
    m_out, m_pii = reference_forward_mixed(topic_features, z0, params, E=emb)
    assert jnp.allclose(out, m_out, atol=2e-3, rtol=2e-3), \
        float(jnp.max(jnp.abs(out - m_out)))
    assert jnp.allclose(pii, m_pii, atol=1e-3, rtol=1e-3), \
        float(jnp.max(jnp.abs(pii - m_pii)))

    # Loose check vs the full-f32 module semantics (bounds bf16 quantization error).
    f_out, f_pii = reference_forward(topic_features, z0, params)
    assert jnp.allclose(out, f_out, atol=1e-1, rtol=1e-1), \
        float(jnp.max(jnp.abs(out - f_out)))
    assert jnp.allclose(pii, f_pii, atol=5e-2, rtol=5e-2), \
        float(jnp.max(jnp.abs(pii - f_pii)))

    # Softmax sanity.
    assert jnp.allclose(jnp.sum(pii, axis=-1), 1.0, atol=1e-3)
    assert bool(jnp.all(pii >= 0.0))

    print("KERNEL_OK")
</pallas_src>

<mosaic_0001>
module attributes {stable_mosaic.version = 11 : i64} {
  func.func @kernel(%arg0: i32, %arg1: memref<8x112xbf16, #tpu.memory_space<vmem>>, %arg2: memref<8x16xbf16, #tpu.memory_space<vmem>>, %arg3: memref<640x128xbf16, #tpu.memory_space<vmem>>, %arg4: memref<8x128xf32, #tpu.memory_space<vmem>>, %arg5: memref<8x128xf32, #tpu.memory_space<vmem>>) attributes {dimension_semantics = [#tpu.dimension_semantics<parallel>], iteration_bounds = array<i64: 1>, scalar_prefetch = 0 : i64, scratch_operands = 0 : i64, tpu.core_type = #tpu.core_type<tc>, window_params = [{transform_indices = @transform_0, window_bounds = array<i64: 8, 112>}, {transform_indices = @transform_1, window_bounds = array<i64: 8, 16>}, {pipeline_mode = #tpu.pipeline_mode<synchronous>, transform_indices = @transform_2, window_bounds = array<i64: 640, 128>}, {pipeline_mode = #tpu.pipeline_mode<synchronous>, transform_indices = @transform_3, window_bounds = array<i64: 8, 128>}, {transform_indices = @transform_4, window_bounds = array<i64: 8, 128>}]} {
    %c0 = arith.constant 0 : index
    %c0_0 = arith.constant 0 : index
    %0 = vector.load %arg1[%c0, %c0_0] : memref<8x112xbf16, #tpu.memory_space<vmem>>, vector<8x112xbf16>
    %c0_1 = arith.constant 0 : index
    %c0_2 = arith.constant 0 : index
    %1 = vector.load %arg2[%c0_1, %c0_2] : memref<8x16xbf16, #tpu.memory_space<vmem>>, vector<8x16xbf16>
    %c0_3 = arith.constant 0 : index
    %c0_4 = arith.constant 0 : index
    %2 = vector.load %arg3[%c0_3, %c0_4] : memref<640x128xbf16, #tpu.memory_space<vmem>>, vector<112x128xbf16>
    %cst = arith.constant dense<0.000000e+00> : vector<8x128xf32>
    %3 = tpu.matmul %0, %2, %cst {dimension_numbers = #tpu.dot_dimension_numbers<[1], [0], [0], [1], [0, 0, 1, 1], [], []>} : vector<8x112xbf16>, vector<112x128xbf16>, vector<8x128xf32> -> vector<8x128xf32>
    %c0_5 = arith.constant 0 : index
    %c0_6 = arith.constant 0 : index
    %4 = vector.load %arg4[%c0_5, %c0_6] : memref<8x128xf32, #tpu.memory_space<vmem>>, vector<1x128xf32>
    %5 = vector.broadcast %4 : vector<1x128xf32> to vector<8x128xf32>
    %6 = arith.addf %3, %5 : vector<8x128xf32>
    %cst_7 = arith.constant 0.000000e+00 : f32
    %7 = vector.broadcast %cst_7 : f32 to vector<8x128xf32>
    %8 = arith.maximumf %6, %7 : vector<8x128xf32>
    %9 = arith.truncf %8 : vector<8x128xf32> to vector<8x128xbf16>
    %c128 = arith.constant 128 : index
    %c0_8 = arith.constant 0 : index
    %10 = vector.load %arg3[%c128, %c0_8] : memref<640x128xbf16, #tpu.memory_space<vmem>>, vector<128x128xbf16>
    %cst_9 = arith.constant dense<0.000000e+00> : vector<8x128xf32>
    %11 = tpu.matmul %9, %10, %cst_9 {dimension_numbers = #tpu.dot_dimension_numbers<[1], [0], [0], [1], [0, 0, 1, 1], [], []>} : vector<8x128xbf16>, vector<128x128xbf16>, vector<8x128xf32> -> vector<8x128xf32>
    %c1 = arith.constant 1 : index
    %c0_10 = arith.constant 0 : index
    %12 = vector.load %arg4[%c1, %c0_10] : memref<8x128xf32, #tpu.memory_space<vmem>>, vector<1x128xf32>
    %13 = vector.broadcast %12 : vector<1x128xf32> to vector<8x128xf32>
    %14 = arith.addf %11, %13 : vector<8x128xf32>
    %cst_11 = arith.constant 0.000000e+00 : f32
    %15 = vector.broadcast %cst_11 : f32 to vector<8x128xf32>
    %16 = arith.maximumf %14, %15 : vector<8x128xf32>
    %17 = arith.truncf %16 : vector<8x128xf32> to vector<8x128xbf16>
    %c256 = arith.constant 256 : index
    %c0_12 = arith.constant 0 : index
    %18 = vector.load %arg3[%c256, %c0_12] : memref<640x128xbf16, #tpu.memory_space<vmem>>, vector<128x128xbf16>
    %cst_13 = arith.constant dense<0.000000e+00> : vector<8x128xf32>
    %19 = tpu.matmul %17, %18, %cst_13 {dimension_numbers = #tpu.dot_dimension_numbers<[1], [0], [0], [1], [0, 0, 1, 1], [], []>} : vector<8x128xbf16>, vector<128x128xbf16>, vector<8x128xf32> -> vector<8x128xf32>
    %c2 = arith.constant 2 : index
    %c0_14 = arith.constant 0 : index
    %20 = vector.load %arg4[%c2, %c0_14] : memref<8x128xf32, #tpu.memory_space<vmem>>, vector<1x128xf32>
    %21 = vector.broadcast %20 : vector<1x128xf32> to vector<8x128xf32>
    %22 = arith.addf %19, %21 : vector<8x128xf32>
    %cst_15 = arith.constant 0.000000e+00 : f32
    %23 = vector.broadcast %cst_15 : f32 to vector<8x128xf32>
    %24 = arith.maximumf %22, %23 : vector<8x128xf32>
    %c5 = arith.constant 5 : index
    %c0_16 = arith.constant 0 : index
    %25 = vector.load %arg4[%c5, %c0_16] : memref<8x128xf32, #tpu.memory_space<vmem>>, vector<1x128xf32>
    %26 = vector.broadcast %25 : vector<1x128xf32> to vector<8x128xf32>
    %27 = arith.addf %24, %26 : vector<8x128xf32>
    %cst_17 = arith.constant dense<0xFF800000> : vector<8xf32>
    %28 = vector.multi_reduction <maximumf>, %27, %cst_17 [1] : vector<8x128xf32> to vector<8xf32>
    %29 = vector.shape_cast %28 : vector<8xf32> to vector<8x1xf32>
    %30 = vector.broadcast %29 : vector<8x1xf32> to vector<8x128xf32>
    %31 = arith.subf %27, %30 : vector<8x128xf32>
    %32 = math.exp %31 : vector<8x128xf32>
    %cst_18 = arith.constant dense<0.000000e+00> : vector<8xf32>
    %33 = vector.multi_reduction <add>, %32, %cst_18 [1] : vector<8x128xf32> to vector<8xf32>
    %34 = vector.shape_cast %33 : vector<8xf32> to vector<8x1xf32>
    %35 = tpu.reciprocal %34 {approx = true} : vector<8x1xf32> -> vector<8x1xf32>
    %36 = arith.mulf %34, %35 : vector<8x1xf32>
    %cst_19 = arith.constant 2.000000e+00 : f32
    %37 = vector.broadcast %cst_19 : f32 to vector<8x1xf32>
    %38 = arith.subf %37, %36 : vector<8x1xf32>
    %39 = arith.mulf %35, %38 : vector<8x1xf32>
    %40 = vector.broadcast %39 : vector<8x1xf32> to vector<8x128xf32>
    %41 = arith.mulf %32, %40 : vector<8x128xf32>
    %c384 = arith.constant 384 : index
    %c0_20 = arith.constant 0 : index
    %42 = vector.load %arg3[%c384, %c0_20] : memref<640x128xbf16, #tpu.memory_space<vmem>>, vector<16x128xbf16>
    %cst_21 = arith.constant dense<0.000000e+00> : vector<8x128xf32>
    %43 = tpu.matmul %1, %42, %cst_21 {dimension_numbers = #tpu.dot_dimension_numbers<[1], [0], [0], [1], [0, 0, 1, 1], [], []>} : vector<8x16xbf16>, vector<16x128xbf16>, vector<8x128xf32> -> vector<8x128xf32>
    %44 = arith.truncf %41 : vector<8x128xf32> to vector<8x128xbf16>
    %c384_22 = arith.constant 384 : index
    %c0_23 = arith.constant 0 : index
    %45 = vector.load %arg3[%c384_22, %c0_23] : memref<640x128xbf16, #tpu.memory_space<vmem>>, vector<128x128xbf16>
    %cst_24 = arith.constant dense<0.000000e+00> : vector<8x128xf32>
    %46 = tpu.matmul %44, %45, %cst_24 {dimension_numbers = #tpu.dot_dimension_numbers<[1], [0], [0], [1], [0, 0, 1, 1], [], []>} : vector<8x128xbf16>, vector<128x128xbf16>, vector<8x128xf32> -> vector<8x128xf32>
    %47 = arith.addf %43, %46 : vector<8x128xf32>
    %c3 = arith.constant 3 : index
    %c0_25 = arith.constant 0 : index
    %48 = vector.load %arg4[%c3, %c0_25] : memref<8x128xf32, #tpu.memory_space<vmem>>, vector<1x128xf32>
    %49 = vector.broadcast %48 : vector<1x128xf32> to vector<8x128xf32>
    %50 = arith.addf %47, %49 : vector<8x128xf32>
    %cst_26 = arith.constant 0.000000e+00 : f32
    %51 = vector.broadcast %cst_26 : f32 to vector<8x128xf32>
    %52 = arith.maximumf %50, %51 : vector<8x128xf32>
    %53 = arith.truncf %52 : vector<8x128xf32> to vector<8x128xbf16>
    %c512 = arith.constant 512 : index
    %c0_27 = arith.constant 0 : index
    %54 = vector.load %arg3[%c512, %c0_27] : memref<640x128xbf16, #tpu.memory_space<vmem>>, vector<128x128xbf16>
    %cst_28 = arith.constant dense<0.000000e+00> : vector<8x128xf32>
    %55 = tpu.matmul %53, %54, %cst_28 {dimension_numbers = #tpu.dot_dimension_numbers<[1], [0], [0], [1], [0, 0, 1, 1], [], []>} : vector<8x128xbf16>, vector<128x128xbf16>, vector<8x128xf32> -> vector<8x128xf32>
    %c4 = arith.constant 4 : index
    %c0_29 = arith.constant 0 : index
    %56 = vector.load %arg4[%c4, %c0_29] : memref<8x128xf32, #tpu.memory_space<vmem>>, vector<1x128xf32>
    %57 = vector.broadcast %56 : vector<1x128xf32> to vector<8x128xf32>
    %58 = arith.addf %55, %57 : vector<8x128xf32>
    %59 = arith.addf %58, %41 : vector<8x128xf32>
    %c0_30 = arith.constant 0 : index
    %c0_31 = arith.constant 0 : index
    %60 = vector.load %arg5[%c0_30, %c0_31] : memref<8x128xf32, #tpu.memory_space<vmem>>, vector<8x128xf32>
    tpu.vector_store %arg5[%c0_30, %c0_31], %59 {strides = array<i32>} : memref<8x128xf32, #tpu.memory_space<vmem>>, vector<8x128xf32>,
    return
  }
  func.func @transform_0(%arg0: i32) -> (i32, i32) {
    %c0_i32 = arith.constant 0 : i32
    %c0_i32_0 = arith.constant 0 : i32
    return %arg0, %c0_i32 : i32, i32
  }
  func.func @transform_1(%arg0: i32) -> (i32, i32) {
    %c0_i32 = arith.constant 0 : i32
    %c0_i32_0 = arith.constant 0 : i32
    return %arg0, %c0_i32 : i32, i32
  }
  func.func @transform_2(%arg0: i32) -> (i32, i32) {
    %c0_i32 = arith.constant 0 : i32
    %c0_i32_0 = arith.constant 0 : i32
    %c0_i32_1 = arith.constant 0 : i32
    return %c0_i32, %c0_i32_0 : i32, i32
  }
  func.func @transform_3(%arg0: i32) -> (i32, i32) {
    %c0_i32 = arith.constant 0 : i32
    %c0_i32_0 = arith.constant 0 : i32
    %c0_i32_1 = arith.constant 0 : i32
    return %c0_i32, %c0_i32_0 : i32, i32
  }
  func.func @transform_4(%arg0: i32) -> (i32, i32) {
    %c0_i32 = arith.constant 0 : i32
    %c0_i32_0 = arith.constant 0 : i32
    return %arg0, %c0_i32 : i32, i32
  }
}

</mosaic_0001>

<bundles_post_ra>
// kernel: tpu_custom_call.1
= control target key start
LH: loop header
LB: loop body
LE: loop exit
PB: predicated region body
PF: predicated region fallthrough
CT: control target
= control target key end

     0   :  { %9 = vsyncpa [#allocation3], 0  ;;  %s920_s0 = inlined_call_operand.hbm [shape: bf16[8,112], index: 0, kind: input, shape index: {}]   ;;  %s921_s1 = inlined_call_operand.hbm [shape: bf16[8,16], index: 1, kind: input, shape index: {}]   ;;  %s922_s2 = inlined_call_operand.hbm [shape: bf16[640,128], index: 2, kind: input, shape index: {}]   ;;  %s923_s3 = inlined_call_operand.hbm [shape: f32[8,128], index: 3, kind: input, shape index: {}]   ;;  %s924_s4 = inlined_call_operand.hbm [shape: f32[8,128], index: 4, kind: output, shape index: {}]  }
   0x1   :  { %10 = vsyncpa [#allocation6], 0 }
   0x2   :  { %11 = vsyncpa [#allocation9], 0  ;;  %s29_s17 = sshll.u32 %s921_s1, 4  ;;  %s30_s17 = int_to_ptr.hbm [resolvable:$true] %s29_s17 }
   0x3   :  { %12 = vsyncpa [#allocation4], 0  ;;  %s873_s18 = smov [#allocation5]   ;;  %s18_s22 = sshll.u32 %s920_s0, 4  ;;  %s19_s22 = int_to_ptr.hbm [resolvable:$true] %s18_s22 }
   0x4   :  { %s31_s19 = sshll.u32 %s873_s18, 4  ;;  %s874_s23 = smov [#allocation2]   ;;  %s32_s19 = int_to_ptr.vmem [resolvable:$true] %s31_s19 }
   0x5   :  { %34 = dma.hbm_to_vmem [thread:$0]  %s30_s17, 64, %s32_s19, [#allocation6]  }
   0x6   :  { %s20_s24 = sshll.u32 %s874_s23, 4  ;;  %s39_s27 = sshll.u32 %s922_s2, 4  ;;  %s21_s24 = int_to_ptr.vmem [resolvable:$true] %s20_s24  ;;  %s40_s27 = int_to_ptr.hbm [resolvable:$true] %s39_s27 }
   0x7   :  { %23 = dma.hbm_to_vmem [thread:$0]  %s19_s22, 64, %s21_s24, [#allocation3]  }
   0x8   :  { %s875_s1 = smov [#allocation7]   ;;  %s53_s5 = sshll.u32 %s923_s3, 4  ;;  %s54_s5 = int_to_ptr.hbm [resolvable:$true] %s53_s5 }
   0x9   :  { %s41_s28 = sshll.u32 %s875_s1, 4  ;;  %s876_s6 = smov 64   ;;  %s42_s28 = int_to_ptr.vmem [resolvable:$true] %s41_s28 }
   0xa   :  { %s877_s0 = smov 4   ;;  %s878_s7 = smov [#allocation8]  }
   0xb   :  { %47 = dma.hbm_to_vmem [thread:$0]  %s40_s27, 5120, %s42_s28, [#allocation6], %s876_s6, %s876_s6, %s877_s0  }
   0xc   :  { %s55_s8 = sshll.u32 %s878_s7, 4  ;;  %s56_s8 = int_to_ptr.vmem [resolvable:$true] %s55_s8 }
   0xd   :  { %58 = dma.hbm_to_vmem [thread:$0]  %s54_s5, 128, %s56_s8, [#allocation9]  }
   0xe   :  { %865 = dma.done.wait [#allocation3], 64  }
   0xf   :  { %866 = vsyncadd [#allocation3], 4294967232 }
  0x10   :  { %867 = dma.done.wait [#allocation6], 5184  }
  0x11   :  { %868 = vsyncadd [#allocation6], 4294962112 }
  0x12   :  { %869 = dma.done.wait [#allocation9], 128  }
  0x13   :  { %870 = vsyncadd [#allocation9], 4294967168  ;;  %v695_v0 = vld [vmem:[#allocation7 + $0x30] sm:$0xff]  ;;  %v694_v1 = vld [vmem:[#allocation7 + $0x28] sm:$0xff]  ;;  %vm136_vm0 = vcmask 916480   ;;  %vm409_vm1 = vcmask 130048  }
  0x14   :  { %141 = vmatpush.bf16.msra.mxu0 %v695_v0  ;;  %v703_v2 = vld [vmem:[#allocation7 + $0x78] sm:$0xff]  ;;  %v702_v3 = vld [vmem:[#allocation7 + $0x70] sm:$0xff]  ;;  %v693_v4 = vld [vmem:[#allocation7 + $0x20] sm:$0xff]  ;;  %s879_s2 = smov [#allocation10]   ;;  %s519_s11 = sshll.u32 %s924_s4, 4  ;;  %s520_s11 = int_to_ptr.hbm [resolvable:$true] %s519_s11 }
  0x15   :  { %221 = vmatpush.bf16.msra.mxu1 %v703_v2  ;;  %v701_v5 = vld [vmem:[#allocation7 + $0x68] sm:$0xff]  ;;  %v692_v6 = vld [vmem:[#allocation7 + $0x18] sm:$0xff]  ;;  %v700_v7 = vld [vmem:[#allocation7 + $0x60] sm:$0xff]  ;;  %s517_s3 = sshll.u32 %s879_s2, 4  ;;  %s518_s3 = int_to_ptr.vmem [resolvable:$true] %s517_s3 }
  0x16   :  { %v691_v8 = vld [vmem:[#allocation7 + $0x10] sm:$0xff]  ;;  %v699_v9 = vld [vmem:[#allocation7 + $0x58] sm:$0xff]  ;;  %v690_v10 = vld [vmem:[#allocation7 + $0x8] sm:$0xff] }
  0x17   :  { %v698_v11 = vld [vmem:[#allocation7 + $0x50] sm:$0xff]  ;;  %v689_v12 = vld [vmem:[#allocation7] sm:$0xff]  ;;  %v76_v13 = vld [vmem:[#allocation2] sm:$0xf] }
  0x18   :  { %142 = vmatpush.bf16.msra.mxu0 %v694_v1  ;;  %v697_v14 = vld [vmem:[#allocation7 + $0x48] sm:$0xff]  ;;  %v696_v15 = vld [vmem:[#allocation7 + $0x40] sm:$0xff]  ;;  %v711_v16 = vld [vmem:[#allocation7 + $0xb8] sm:$0xff] }
  0x19   :  { %222 = vmatpush.bf16.msra.mxu1 %v702_v3  ;;  %302 = vmatpush.bf16.msra.mxu2 %v711_v16  ;;  %v710_v17 = vld [vmem:[#allocation7 + $0xb0] sm:$0xff]  ;;  %v709_v18 = vld [vmem:[#allocation7 + $0xa8] sm:$0xff]  ;;  %v708_v19 = vld [vmem:[#allocation7 + $0xa0] sm:$0xff] }
  0x1a   :  { %v707_v20 = vld [vmem:[#allocation7 + $0x98] sm:$0xff]  ;;  %v706_v21 = vld [vmem:[#allocation7 + $0x90] sm:$0xff]  ;;  %v735_v22 = vld [vmem:[#allocation8] ss:$0 sm:$0xff] }
  0x1b   :  { %v705_v28 = vld [vmem:[#allocation7 + $0x88] sm:$0xff]  ;;  %v704_v29 = vld [vmem:[#allocation7 + $0x80] sm:$0xff]  ;;  %v719_v43 = vld [vmem:[#allocation7 + $0xf8] sm:$0xff] }
  0x1c   :  { %143 = vmatpush.bf16.msra.mxu0 %v693_v4  ;;  %v736_v30 = vld [vmem:[#allocation8 + $0x1] ss:$0 sm:$0xff]  ;;  %v737_v36 = vld [vmem:[#allocation8 + $0x2] ss:$0 sm:$0xff]  ;;  %v738_v39 = vld [vmem:[#allocation8 + $0x5] ss:$0 sm:$0xff]  ;;  %396 = vmatpush.bf16.msra.mxu3 %v719_v43 }
  0x1d   :  { %223 = vmatpush.bf16.msra.mxu1 %v701_v5  ;;  %303 = vmatpush.bf16.msra.mxu2 %v710_v17  ;;  %v718_v44 = vld [vmem:[#allocation7 + $0xf0] sm:$0xff]  ;;  %v717_v45 = vld [vmem:[#allocation7 + $0xe8] sm:$0xff]  ;;  %v716_v46 = vld [vmem:[#allocation7 + $0xe0] sm:$0xff] }
  0x1e   :  { %v715_v51 = vld [vmem:[#allocation7 + $0xd8] sm:$0xff]  ;;  %v714_v52 = vld [vmem:[#allocation7 + $0xd0] sm:$0xff]  ;;  %v713_v53 = vld [vmem:[#allocation7 + $0xc8] sm:$0xff] }
  0x1f   :  { %v712_v54 = vld [vmem:[#allocation7 + $0xc0] sm:$0xff]  ;;  %v77_v55 = vld [vmem:[#allocation5] sm:$0xf]  ;;  %v726_v57 = vld [vmem:[#allocation7 + $0x130] sm:$0xff] }
  0x20   :  { %144 = vmatpush.bf16.msra.mxu0 %v692_v6  ;;  %397 = vmatpush.bf16.msra.mxu3 %v718_v44  ;;  %v727_v56 = vld [vmem:[#allocation7 + $0x138] sm:$0xff]  ;;  %v725_v58 = vld [vmem:[#allocation7 + $0x128] sm:$0xff]  ;;  %v724_v59 = vld [vmem:[#allocation7 + $0x120] sm:$0xff] }
  0x21   :  { %224 = vmatpush.bf16.msra.mxu1 %v700_v7  ;;  %304 = vmatpush.bf16.msra.mxu2 %v709_v18  ;;  %v723_v3 = vld [vmem:[#allocation7 + $0x118] sm:$0xff]  ;;  %v722_v4 = vld [vmem:[#allocation7 + $0x110] sm:$0xff]  ;;  %v721_v7 = vld [vmem:[#allocation7 + $0x108] sm:$0xff] }
  0x22   :  { %v740_v16 = vld [vmem:[#allocation8 + $0x4] ss:$0 sm:$0xff] }
  0x24   :  { %145 = vmatpush.bf16.msra.mxu0 %v691_v8  ;;  %398 = vmatpush.bf16.msra.mxu3 %v717_v45  ;;  %v720_v8 = vld [vmem:[#allocation7 + $0x100] sm:$0xff] }
  0x25   :  { %225 = vmatpush.bf16.msra.mxu1 %v699_v9  ;;  %305 = vmatpush.bf16.msra.mxu2 %v708_v19  ;;  %v739_v9 = vld [vmem:[#allocation8 + $0x3] ss:$0 sm:$0xff] }
  0x28   :  { %146 = vmatpush.bf16.msra.mxu0 %v690_v10  ;;  %399 = vmatpush.bf16.msra.mxu3 %v716_v46 }
  0x29   :  { %226 = vmatpush.bf16.msra.mxu1 %v698_v11  ;;  %306 = vmatpush.bf16.msra.mxu2 %v707_v20 }
  0x2c   :  { %147 = vmatpush.bf16.msra.mxu0 %v689_v12  ;;  %400 = vmatpush.bf16.msra.mxu3 %v715_v51 }
  0x2d   :  { %227 = vmatpush.bf16.msra.mxu1 %v697_v14  ;;  %307 = vmatpush.bf16.msra.mxu2 %v706_v21 }
  0x2f   :  { %559 = vmatmul.msk.bf16.vlgmr.msra.gmra.mxu0 %vm136_vm0, %v76_v13 }
  0x30   :  { %401 = vmatpush.bf16.msra.mxu3 %v714_v52  ;;  %420 = vmatpush.bf16.msrb.mxu0 %v712_v54 }
  0x31   :  { %228 = vmatpush.bf16.msra.mxu1 %v696_v15  ;;  %308 = vmatpush.bf16.msra.mxu2 %v705_v28 }
  0x34   :  { %402 = vmatpush.bf16.msra.mxu3 %v713_v53 }
  0x35   :  { %309 = vmatpush.bf16.msra.mxu2 %v704_v29  ;;  %497 = vmatpush.bf16.msrb.mxu1 %v727_v56 }
  0x38   :  { %403 = vmatpush.bf16.msra.mxu3 %v712_v54 }
  0x39   :  { %498 = vmatpush.bf16.msrb.mxu1 %v726_v57 }
  0x3d   :  { %499 = vmatpush.bf16.msrb.mxu1 %v725_v58 }
  0x3f   :  { %656 = vmatmul.msk.bf16.vlgmr.msrb.gmra.mxu0 %vm409_vm1, %v77_v55 }
  0x41   :  { %500 = vmatpush.bf16.msrb.mxu1 %v724_v59 }
  0x45   :  { %501 = vmatpush.bf16.msrb.mxu1 %v723_v3 }
  0x49   :  { %502 = vmatpush.bf16.msrb.mxu1 %v722_v4 }
  0x4d   :  { %503 = vmatpush.bf16.msrb.mxu1 %v721_v7 }
  0x51   :  { %504 = vmatpush.bf16.msrb.mxu1 %v720_v8 }
  0xac   :  { %v149_v23 = vpop.f32.mrf.mxu0 }
  0xad   :  { %v150_v24 = vadd.f32 %v735_v22, %v149_v23 }
  0xaf   :  { %v153_v25 = vmax.f32 %v150_v24, 0.0 }
  0xb1   :  { %v154_v26 = vpack.c.bf16 %v153_v25, %v153_v25 }
  0xb3   :  { %229 = vmatmul.bf16.vlgmr.msra.gmra.mxu1 %v154_v26 }
  0xb4   :  { %v151_v27 = vpop.f32.mrf.mxu0 }
  0xbc   :  { %v422_v5 = vpop.f32.mrf.mxu0 }
  0xc4   :  { %v424_v6 = vpop.f32.mrf.mxu0 }
 0x130   :  { %v230_v31 = vpop.f32.mrf.mxu1 }
 0x131   :  { %v231_v32 = vadd.f32 %v736_v30, %v230_v31 }
 0x133   :  { %v234_v33 = vmax.f32 %v231_v32, 0.0 }
 0x135   :  { %v235_v34 = vpack.c.bf16 %v234_v33, %v234_v33 }
 0x137   :  { %310 = vmatmul.bf16.vlgmr.msra.gmra.mxu2 %v235_v34 }
 0x138   :  { %v232_v35 = vpop.f32.mrf.mxu1 }
 0x1ba   :  { %v311_v37 = vpop.f32.mrf.mxu2 }
 0x1bb   :  { %v312_v38 = vadd.f32 %v737_v36, %v311_v37 }
 0x1bd   :  { %v315_v40 = vmax.f32 %v312_v38, 0.0 }
 0x1bf   :  { %v318_v41 = vadd.f32 %v738_v39, %v315_v40 }
 0x1c1   :  { %319 = vmax.xlane.f32.xlu0 %v318_v41 }
 0x1c2   :  { %v313_v42 = vpop.f32.mrf.mxu2 }
 0x234   :  { %v320_v47 = vpop.xlane.xlu0 %319 }
 0x235   :  { %v321_v48 = vsub.f32 %v318_v41, %v320_v47 }
 0x237   :  { %v322_v49 = vmul.f32 1.442695, %v321_v48 }
 0x239   :  { %741 = vpow2.f32 %v322_v49 }
 0x23f   :  { %v742_v50 = vpop.eup %741 }
 0x240   :  { %324 = vadd.xlane.f32.xlu0 %v742_v50 }
 0x2b3   :  { %v325_v60 = vpop.xlane.xlu0 %324 }
 0x2b4   :  { %743 = vrcp.f32 %v325_v60 }
 0x2ba   :  { %v744_v61 = vpop.eup %743 }
 0x2bb   :  { %v327_v62 = vmul.f32 %v744_v61, %v325_v60 }
 0x2bd   :  { %v328_v63 = vsub.f32 2.0, %v327_v62 }
 0x2bf   :  { %v329_v0 = vmul.f32 %v744_v61, %v328_v63 }
 0x2c1   :  { %v330_v1 = vmul.f32 %v742_v50, %v329_v0 }
 0x2c3   :  { %v333_v2 = vpack.c.bf16 %v330_v1, %v330_v1 }
 0x2c5   :  { %404 = vmatmul.bf16.vlgmr.msra.gmra.mxu3 %v333_v2 }
 0x348   :  { %v405_v10 = vpop.f32.mrf.mxu3 }
 0x349   :  { %v423_v11 = vadd.f32 %v422_v5, %v405_v10 }
 0x34b   :  { %v428_v12 = vadd.f32 %v739_v9, %v423_v11 }
 0x34d   :  { %v429_v13 = vmax.f32 %v428_v12, 0.0 }
 0x34f   :  { %v430_v14 = vpack.c.bf16 %v429_v13, %v429_v13 }
 0x350   :  { %v407_v15 = vpop.f32.mrf.mxu3 }
 0x351   :  { %505 = vmatmul.bf16.vlgmr.msrb.gmra.mxu1 %v430_v14 }
 0x3ce   :  { %v506_v17 = vpop.f32.mrf.mxu1 }
 0x3cf   :  { %v507_v18 = vadd.f32 %v740_v16, %v506_v17 }
 0x3d1   :  { %v510_v19 = vadd.f32 %v507_v18, %v330_v1 }
 0x3d3   :  { %511 = vst [vmem:[#allocation10] sm:$0xff] %v510_v19 }
 0x3d4   :  { %522 = dma.vmem_to_hbm [thread:$0]  %s518_s3, 128, %s520_s11, [#allocation4]  }
 0x3d6   :  { %v508_v20 = vpop.f32.mrf.mxu1 }
 0x3d7   :  { %871 = dma.done.wait [#allocation4], 128  }
 0x3d8   :  { %872 = vsyncadd [#allocation4], 4294967168 }
 0x3d9   :  { %527 = vsyncpa [#allocation3], 1 }
 0x3da   :  { %528 = vsyncpa [#allocation6], 1 }
 0x3db   :  { %529 = vsyncpa [#allocation9], 1 }
 0x3dc   :  { %530 = vsyncpa [#allocation4], 1 }

</bundles_post_ra>
